<compile_context>
chip_gen: v7x
topology: tpu7x:2x2x1
jax: 0.10.0
libtpu: 0.0.40
codegen_flags: <defaults>
</compile_context>

<pallas_src>
import functools
import math

import jax
import jax.numpy as jnp
from jax import lax
from jax.experimental import pallas as pl
from jax.experimental.pallas import tpu as pltpu


# ---------------------------------------------------------------------------
# Tiling constants
# ---------------------------------------------------------------------------
_LANE = 128
_SUBLANE = 8
_TARGET_BLOCK_ELEMS = 1024 * 1024    # ~4 MiB (f32) per input block
_MAX_BLOCK_N = 32 * 1024             # lane-width cap (keeps acc/out tiny)
_MAX_BLOCK_B = 4 * 1024              # sublane cap
_PALLAS_MIN_ELEMENTS = 256 * 1024    # below this, use a fused XLA reduction


def _round_up(x: int, m: int) -> int:
    return -(-x // m) * m


def _cdiv(a: int, b: int) -> int:
    return -(-a // b)


def _tensorcores_per_device() -> int:
    """Best-effort count of TensorCores addressable by one Pallas program."""
    try:
        dev = jax.devices()[0]
    except Exception:  # pragma: no cover - no backend
        return 1
    nc = getattr(dev, "num_cores", None)
    if isinstance(nc, int) and nc > 0:
        return min(int(nc), 2)
    kind = str(getattr(dev, "device_kind", "")).lower()
    # v4 / v5p megacore and v7x expose 2 TensorCores per device; everything
    # else (v2/v3/v5e/v6e) is single-core -> safe default 1.
    if ("v4" in kind) or ("v5p" in kind) or ("7" in kind):
        return 2
    return 1


# ---------------------------------------------------------------------------
# Kernel: streaming sum of squared errors with an (8, block_n) VMEM accumulator
# ---------------------------------------------------------------------------
def _sse_kernel(*refs, block_b: int, batch_rows: int,
                need_colmask: bool, need_rowmask: bool):
    if need_colmask:
        tgt_ref, pred_ref, cmask_ref, out_ref, acc_ref = refs
    else:
        tgt_ref, pred_ref, out_ref, acc_ref = refs
        cmask_ref = None

    bi = pl.program_id(1)   # batch-block index      (reduction axis)
    nj = pl.program_id(2)   # column-block index     (reduction axis)

    @pl.when((bi == 0) & (nj == 0))
    def _init():
        acc_ref[...] = jnp.zeros_like(acc_ref)

    d = pred_ref[...].astype(jnp.float32) - tgt_ref[...].astype(jnp.float32)
    sq = d * d

    if need_colmask:
        # Column mask carries: user feature mask, feature-tail raggedness and
        # megacore overshoot blocks.  Use where (not multiply): masked / OOB
        # elements may hold NaN/Inf garbage.
        keep = cmask_ref[...] != 0.0                       # (1, block_n)
        sq = jnp.where(keep, sq, 0.0)

    if need_rowmask:
        rows = bi * block_b + lax.broadcasted_iota(jnp.int32, (block_b, 1), 0)
        sq = jnp.where(rows < batch_rows, sq, 0.0)

    # Fold the block's rows onto the (8, block_n) accumulator.  The reshape is
    # a layout no-op (row groups of 8 == vreg sublane groups) and the sum over
    # axis 0 is pure VPU vreg adds -- no per-step XLU cross-lane reduce and no
    # scalar read-modify-write.
    acc_ref[...] += sq.reshape(block_b // _SUBLANE, _SUBLANE, sq.shape[-1]).sum(axis=0)

    @pl.when((bi == pl.num_programs(1) - 1) & (nj == pl.num_programs(2) - 1))
    def _flush():
        out_ref[...] = acc_ref[...]   # lane-dense unmasked store, once per slice


# ---------------------------------------------------------------------------
# Forward pass: identity (per the reference module), no kernel launch.
# ---------------------------------------------------------------------------
def vae_decoder_forward(x: jax.Array) -> jax.Array:
    return x


# ---------------------------------------------------------------------------
# recon_loss wrapper
# ---------------------------------------------------------------------------
def vae_decoder_recon_loss(
    targets: jax.Array,
    predictions: jax.Array,
    mask: jax.Array | None = None,
    *,
    reduction: str = "sum",
    min_pallas_elements: int = _PALLAS_MIN_ELEMENTS,
    block_elems: int = _TARGET_BLOCK_ELEMS,
    max_block_n: int = _MAX_BLOCK_N,
    num_cores: int | None = None,
) -> jax.Array:
    """Pallas implementation of VAEDecoder.recon_loss (F.mse_loss based).

    The reference always calls the loss with reduction='none', sums over
    features per sample, then `kws_loss['reduction']` selects sum vs. mean
    over the batch -- so 'mean' divides the total SSE by the batch size.
    """
    if targets.shape != predictions.shape:
        raise ValueError("targets and predictions must have the same shape")

    b = targets.shape[0]
    n = max(1, math.prod(targets.shape[1:]))
    feat_shape = targets.shape[1:]

    # ---- optional mask -> a tiny (n,) boolean column-keep vector ----------
    keep_full = None
    if mask is not None:
        m = jnp.asarray(mask)
        if m.dtype == jnp.bool_:
            if m.shape != tuple(feat_shape[: m.ndim]):
                raise ValueError("boolean mask must match the leading feature dims")
            keep = m
        else:
            # Integer index mask over axis 1 of the original tensor.
            # TODO(synk): duplicate / reordered integer indices (counted
            # multiple times by PyTorch fancy indexing) are not reproduced.
            keep = jnp.zeros((feat_shape[0],), jnp.bool_).at[m].set(True)
        keep = keep.reshape(keep.shape + (1,) * (len(feat_shape) - keep.ndim))
        keep_full = jnp.broadcast_to(keep, feat_shape).reshape(-1)   # (n,) bool

    t_elems = b * n

    # ---- small-input fast path: fused XLA reduction, no pallas_call --------
    if t_elems < min_pallas_elements:
        t2 = targets.reshape(b, n).astype(jnp.float32)
        p2 = predictions.reshape(b, n).astype(jnp.float32)
        sq = (p2 - t2) ** 2
        if keep_full is not None:
            sq = jnp.where(keep_full[None, :], sq, 0.0)
        total = jnp.sum(sq)
        return total if reduction == "sum" else total / jnp.float32(b)

    # ---- Pallas path: stream (B, N) blocks straight from HBM ---------------
    t2 = targets.reshape(b, n)        # free view for contiguous row-major data
    p2 = predictions.reshape(b, n)

    cores = num_cores if num_cores is not None else _tensorcores_per_device()
    max_block_n = max(_LANE, _round_up(max_block_n, _LANE))
    block_elems = max(_SUBLANE * _LANE, block_elems)

    n_ceil = _round_up(n, _LANE)
    b_ceil = _round_up(b, _SUBLANE)

    # Lane width: full feature row when it fits (fully contiguous DMA), capped.
    block_n = min(n_ceil, max_block_n)
    if cores > 1 and n_ceil >= 2 * _LANE:
        # Ensure >= `cores` column blocks so the parallel axis has work.
        block_n = min(block_n, _round_up(_cdiv(n_ceil, cores), _LANE))
    # Sublane height: fill the per-input block-size target, multiple of 8.
    block_b = max(_SUBLANE,
                  min(b_ceil, _MAX_BLOCK_B,
                      (block_elems // block_n) // _SUBLANE * _SUBLANE))

    nb = _cdiv(b, block_b)
    nn_raw = _cdiv(n, block_n)
    p_axis = cores if (cores > 1 and nn_raw >= 2) else 1
    nn_per = _cdiv(nn_raw, p_axis)
    nn_total = p_axis * nn_per
    nn_last = nn_raw - 1

    need_rowmask = (b % block_b) != 0
    need_colmask = (keep_full is not None) or (n % block_n != 0) or (nn_total != nn_raw)

    def data_map(p, bi, nj):
        # Clamp overshoot column blocks (megacore split) to the last real
        # block; their contribution is zeroed by the column mask.
        return (bi, jnp.minimum(p * nn_per + nj, nn_last))

    args = [t2, p2]
    in_specs = [pl.BlockSpec((block_b, block_n), data_map),
                pl.BlockSpec((block_b, block_n), data_map)]

    if need_colmask:
        n_mask = nn_total * block_n
        col = (keep_full.astype(jnp.float32) if keep_full is not None
               else jnp.ones((n,), jnp.float32))
        if n_mask != n:
            col = jnp.pad(col, (0, n_mask - n))   # tiny (n,)-sized array only
        args.append(col.reshape(1, n_mask))
        in_specs.append(
            pl.BlockSpec((1, block_n), lambda p, bi, nj: (0, p * nn_per + nj)))

    out_shape = jax.ShapeDtypeStruct((_SUBLANE, p_axis * block_n), jnp.float32)
    out_spec = pl.BlockSpec((_SUBLANE, block_n), lambda p, bi, nj: (0, p))

    itemsize = jnp.dtype(targets.dtype).itemsize
    out_bytes = _SUBLANE * p_axis * block_n * 4
    footprint = (2 * 2 * block_b * block_n * itemsize          # 2 inputs, dbl-buffered
                 + (2 * block_n * 4 if need_colmask else 0)    # column mask
                 + 3 * _SUBLANE * block_n * 4)                 # acc + out buffers
    vmem_limit = int(min(100 * 2**20, max(32 * 2**20, footprint + 8 * 2**20)))

    cost = pl.CostEstimate(
        flops=5 * t_elems,
        transcendentals=0,
        bytes_accessed=2 * t_elems * itemsize
        + (nb * nn_total * block_n * 4 if need_colmask else 0)
        + out_bytes,
    )

    out = pl.pallas_call(
        functools.partial(_sse_kernel,
                          block_b=block_b, batch_rows=b,
                          need_colmask=need_colmask, need_rowmask=need_rowmask),
        out_shape=out_shape,
        grid_spec=pltpu.PrefetchScalarGridSpec(
            num_scalar_prefetch=0,
            grid=(p_axis, nb, nn_per),
            in_specs=in_specs,
            out_specs=out_spec,
            scratch_shapes=[pltpu.VMEM((_SUBLANE, block_n), jnp.float32)],
        ),
        compiler_params=pltpu.CompilerParams(
            dimension_semantics=("parallel", "arbitrary", "arbitrary"),
            vmem_limit_bytes=vmem_limit,
        ),
        cost_estimate=cost,
    )(*args)

    total = jnp.sum(out)              # tiny (8, P*block_n) final reduce in XLA
    if reduction != "sum":
        total = total / jnp.float32(b)
    return total


# ---------------------------------------------------------------------------
# Thin Python-side analogue of the nn.Module (no learnable parameters).
# ---------------------------------------------------------------------------
class VAEDecoderPallas:
    def __init__(self, latent_dim: int = 20, kws_loss: dict | None = None) -> None:
        self.latent_dim = latent_dim
        self.kws_loss = {"reduction": "sum"} if kws_loss is None else dict(kws_loss)

    def forward(self, x: jax.Array) -> jax.Array:
        return vae_decoder_forward(x)

    __call__ = forward

    def recon_loss(self, targets, predictions, mask=None, **kwargs):
        return vae_decoder_recon_loss(
            targets, predictions, mask,
            reduction=self.kws_loss.get("reduction", "sum"),
            **kwargs,
        )


if __name__ == "__main__":
    key = jax.random.PRNGKey(0)
    k1, k2, k3, k4, k5 = jax.random.split(key, 5)

    latent_dim, batch = 32, 2
    z = jax.random.normal(k1, (batch, latent_dim), dtype=jnp.float32)
    targets = jax.random.normal(k2, (batch, 4, 16, 16), dtype=jnp.float32)
    predictions = jax.random.normal(k3, (batch, 4, 16, 16), dtype=jnp.float32)

    dec_sum = VAEDecoderPallas(latent_dim, {"reduction": "sum"})
    dec_mean = VAEDecoderPallas(latent_dim, {"reduction": "mean"})

    # forward: identity
    y = jax.block_until_ready(dec_sum.forward(z))
    assert jnp.array_equal(y, z), "forward (identity) mismatch"

    t2 = targets.reshape(batch, -1)
    p2 = predictions.reshape(batch, -1)
    per_sample = jnp.sum((p2 - t2) ** 2, axis=-1)

    # 1) default path (small input -> fused XLA fast path)
    loss_sum = jax.block_until_ready(dec_sum.recon_loss(targets, predictions))
    assert jnp.allclose(loss_sum, per_sample.sum(), rtol=1e-5, atol=1e-5), "sum loss"
    loss_mean = jax.block_until_ready(dec_mean.recon_loss(targets, predictions))
    assert jnp.allclose(loss_mean, per_sample.mean(), rtol=1e-5, atol=1e-5), "mean loss"

    # 2) force the Pallas kernel on the same small input (ragged batch rows)
    loss_k = jax.block_until_ready(
        dec_sum.recon_loss(targets, predictions, min_pallas_elements=0))
    assert jnp.allclose(loss_k, per_sample.sum(), rtol=1e-5, atol=1e-5), "pallas sum"

    # 3) Pallas kernel, multi-block grid + ragged batch tail + boolean mask
    tgt3 = jax.random.normal(k4, (6, 5, 16, 16), dtype=jnp.float32)   # N = 1280
    prd3 = jax.random.normal(k5, (6, 5, 16, 16), dtype=jnp.float32)
    bool_mask = jnp.array([True, False, True, False, True])
    sel_t = tgt3[:, bool_mask].reshape(6, -1)
    sel_p = prd3[:, bool_mask].reshape(6, -1)
    ref_masked = jnp.sum((sel_p - sel_t) ** 2)
    loss_masked = jax.block_until_ready(dec_sum.recon_loss(
        tgt3, prd3, mask=bool_mask,
        min_pallas_elements=0, block_elems=2048, max_block_n=256))
    assert jnp.allclose(loss_masked, ref_masked, rtol=1e-4, atol=1e-4), "masked loss"

    # 4) exercise the 2-TensorCore split path (also valid on 1-TC chips: the
    #    extra "parallel" slice just runs sequentially), including the clamped
    #    overshoot column block (5 real column blocks split 3 + 3).
    ref3 = jnp.sum((prd3.reshape(6, -1) - tgt3.reshape(6, -1)) ** 2)
    loss_mc = jax.block_until_ready(dec_sum.recon_loss(
        tgt3, prd3, min_pallas_elements=0, block_elems=2048,
        max_block_n=256, num_cores=2))
    assert jnp.allclose(loss_mc, ref3, rtol=1e-4, atol=1e-4), "megacore-split loss"

    # 5) integer index mask over axis 1 (deduplicated; see TODO in wrapper)
    idx_mask = jnp.array([0, 2, 3])
    sel_t = targets[:, idx_mask].reshape(batch, -1)
    sel_p = predictions[:, idx_mask].reshape(batch, -1)
    ref_idx = jnp.sum((sel_p - sel_t) ** 2)
    loss_idx = jax.block_until_ready(dec_sum.recon_loss(
        targets, predictions, mask=idx_mask, min_pallas_elements=0))
    assert jnp.allclose(loss_idx, ref_idx, rtol=1e-5, atol=1e-5), "index-mask loss"

    print("KERNEL_OK")
</pallas_src>

<mosaic_0001>
module attributes {stable_mosaic.version = 11 : i64} {
  func.func @_sse_kernel(%arg0: i32, %arg1: i32, %arg2: i32, %arg3: memref<8x1024xf32, #tpu.memory_space<vmem>>, %arg4: memref<8x1024xf32, #tpu.memory_space<vmem>>, %arg5: memref<8x1024xf32, #tpu.memory_space<vmem>>, %arg6: memref<8x1024xf32, #tpu.memory_space<vmem>>) attributes {dimension_semantics = [#tpu.dimension_semantics<parallel>, #tpu.dimension_semantics<arbitrary>, #tpu.dimension_semantics<arbitrary>], iteration_bounds = array<i64: 1, 1, 1>, scalar_prefetch = 0 : i64, scratch_operands = 1 : i64, tpu.core_type = #tpu.core_type<tc>, window_params = [{transform_indices = @transform_0, window_bounds = array<i64: 8, 1024>}, {transform_indices = @transform_1, window_bounds = array<i64: 8, 1024>}, {transform_indices = @transform_2, window_bounds = array<i64: 8, 1024>}]} {
    %c0_i32 = arith.constant 0 : i32
    %0 = arith.cmpi eq, %arg1, %c0_i32 : i32
    %c0_i32_0 = arith.constant 0 : i32
    %1 = arith.cmpi eq, %arg2, %c0_i32_0 : i32
    %2 = arith.andi %0, %1 : i1
    %3 = arith.extui %2 : i1 to i32
    %c0_i32_1 = arith.constant 0 : i32
    %4 = arith.cmpi ne, %3, %c0_i32_1 : i32
    scf.if %4 {
      %cst_13 = arith.constant 0.000000e+00 : f32
      %29 = vector.broadcast %cst_13 : f32 to vector<8x1024xf32>
      %c0_14 = arith.constant 0 : index
      %c0_15 = arith.constant 0 : index
      %30 = vector.load %arg6[%c0_14, %c0_15] : memref<8x1024xf32, #tpu.memory_space<vmem>>, vector<8x1024xf32>
      tpu.vector_store %arg6[%c0_14, %c0_15], %29 {strides = array<i32>} : memref<8x1024xf32, #tpu.memory_space<vmem>>, vector<8x1024xf32>,
    } else {
    }
    %c0 = arith.constant 0 : index
    %c0_2 = arith.constant 0 : index
    %5 = vector.load %arg4[%c0, %c0_2] : memref<8x1024xf32, #tpu.memory_space<vmem>>, vector<8x1024xf32>
    %c0_3 = arith.constant 0 : index
    %c0_4 = arith.constant 0 : index
    %6 = vector.load %arg3[%c0_3, %c0_4] : memref<8x1024xf32, #tpu.memory_space<vmem>>, vector<8x1024xf32>
    %7 = arith.subf %5, %6 : vector<8x1024xf32>
    %8 = arith.mulf %7, %7 : vector<8x1024xf32>
    %c8_i32 = arith.constant 8 : i32
    %9 = arith.muli %arg1, %c8_i32 : i32
    %10 = tpu.iota {dimensions = array<i32: 0>} : vector<8x1xi32>
    %11 = vector.broadcast %9 : i32 to vector<8x1xi32>
    %12 = arith.addi %11, %10 : vector<8x1xi32>
    %c2_i32 = arith.constant 2 : i32
    %13 = vector.broadcast %c2_i32 : i32 to vector<8x1xi32>
    %14 = arith.cmpi slt, %12, %13 : vector<8x1xi32>
    %cst = arith.constant 0.000000e+00 : f32
    %15 = vector.shape_cast %14 : vector<8x1xi1> to vector<8x1xi1>
    %16 = vector.broadcast %15 : vector<8x1xi1> to vector<8x1024xi1>
    %17 = vector.broadcast %cst : f32 to vector<8x1024xf32>
    %18 = arith.select %16, %8, %17 : vector<8x1024xi1>, vector<8x1024xf32>
    %c0_5 = arith.constant 0 : index
    %c0_6 = arith.constant 0 : index
    %19 = vector.load %arg6[%c0_5, %c0_6] : memref<8x1024xf32, #tpu.memory_space<vmem>>, vector<8x1024xf32>
    %20 = vector.shape_cast %18 : vector<8x1024xf32> to vector<1x8x1024xf32>
    %cst_7 = arith.constant dense<0.000000e+00> : vector<8x1024xf32>
    %21 = vector.multi_reduction <add>, %20, %cst_7 [0] : vector<1x8x1024xf32> to vector<8x1024xf32>
    %22 = arith.addf %19, %21 : vector<8x1024xf32>
    %c0_8 = arith.constant 0 : index
    %c0_9 = arith.constant 0 : index
    %23 = vector.load %arg6[%c0_8, %c0_9] : memref<8x1024xf32, #tpu.memory_space<vmem>>, vector<8x1024xf32>
    tpu.vector_store %arg6[%c0_8, %c0_9], %22 {strides = array<i32>} : memref<8x1024xf32, #tpu.memory_space<vmem>>, vector<8x1024xf32>,
    %c0_i32_10 = arith.constant 0 : i32
    %24 = arith.cmpi eq, %arg1, %c0_i32_10 : i32
    %c0_i32_11 = arith.constant 0 : i32
    %25 = arith.cmpi eq, %arg2, %c0_i32_11 : i32
    %26 = arith.andi %24, %25 : i1
    %27 = arith.extui %26 : i1 to i32
    %c0_i32_12 = arith.constant 0 : i32
    %28 = arith.cmpi ne, %27, %c0_i32_12 : i32
    scf.if %28 {
      %c0_13 = arith.constant 0 : index
      %c0_14 = arith.constant 0 : index
      %29 = vector.load %arg6[%c0_13, %c0_14] : memref<8x1024xf32, #tpu.memory_space<vmem>>, vector<8x1024xf32>
      %c0_15 = arith.constant 0 : index
      %c0_16 = arith.constant 0 : index
      %30 = vector.load %arg5[%c0_15, %c0_16] : memref<8x1024xf32, #tpu.memory_space<vmem>>, vector<8x1024xf32>
      tpu.vector_store %arg5[%c0_15, %c0_16], %29 {strides = array<i32>} : memref<8x1024xf32, #tpu.memory_space<vmem>>, vector<8x1024xf32>,
    } else {
    }
    return
  }
  func.func @transform_0(%arg0: i32, %arg1: i32, %arg2: i32) -> (i32, i32) {
    %c1_i32 = arith.constant 1 : i32
    %0 = arith.muli %arg0, %c1_i32 : i32
    %1 = arith.addi %0, %arg2 : i32
    %c0_i32 = arith.constant 0 : i32
    %2 = arith.minsi %1, %c0_i32 : i32
    %c0_i32_0 = arith.constant 0 : i32
    return %arg1, %2 : i32, i32
  }
  func.func @transform_1(%arg0: i32, %arg1: i32, %arg2: i32) -> (i32, i32) {
    %c1_i32 = arith.constant 1 : i32
    %0 = arith.muli %arg0, %c1_i32 : i32
    %1 = arith.addi %0, %arg2 : i32
    %c0_i32 = arith.constant 0 : i32
    %2 = arith.minsi %1, %c0_i32 : i32
    %c0_i32_0 = arith.constant 0 : i32
    return %arg1, %2 : i32, i32
  }
  func.func @transform_2(%arg0: i32, %arg1: i32, %arg2: i32) -> (i32, i32) {
    %c0_i32 = arith.constant 0 : i32
    %c0_i32_0 = arith.constant 0 : i32
    return %c0_i32, %arg0 : i32, i32
  }
}

</mosaic_0001>

<bundles_post_ra>
// kernel: tpu_custom_call.1
= control target key start
LH: loop header
LB: loop body
LE: loop exit
PB: predicated region body
PF: predicated region fallthrough
CT: control target
= control target key end

     0   :  { %7 = vsyncpa [#allocation4], 0  ;;  %s435_s0 = inlined_call_operand.hbm [shape: f32[2,1024], index: 0, kind: input, shape index: {}]   ;;  %s436_s1 = inlined_call_operand.hbm [shape: f32[2,1024], index: 1, kind: input, shape index: {}]   ;;  %s437_s2 = inlined_call_operand.hbm [shape: f32[8,1024], index: 2, kind: output, shape index: {}]  }
   0x1   :  { %8 = vsyncpa [#allocation7], 0 }
   0x2   :  { %9 = vsyncpa [#allocation5], 0 }
   0x3   :  { %18 = vsyncadd [#allocation4], 768  ;;  %s358_s9 = smov [#allocation3]   ;;  %s286_s13 = scalar_lea.hbm %s435_s0, 256 }
   0x4   :  { %s21_s10 = sshll.u32 %s358_s9, 4  ;;  %p287_p0 = scmp.ne.s32.totalorder %s435_s0, %s286_s13  ;;  %s22_s10 = int_to_ptr.vmem [resolvable:$true] %s21_s10 }
   0x5   :  { %p290_p1 = scmp.lt.u32.totalorder %s286_s13, %s435_s0 }
   0x7   :  { %p292_p2 = pnand %p290_p1, %p287_p0 }
   0x9   :  { %295 = shalt.err (!%p292_p2)
}
   0xa   :  { %s296_s18 = scalar_lea.vmem %s22_s10, 256  ;;  %s300_s19 = scalar_lea.vmem %s22_s10, 1024 }
   0xb   :  { %p297_p3 = scmp.ne.s32.totalorder %s22_s10, %s296_s18  ;;  %p301_p4 = scmp.lt.s32.totalorder %s22_s10, %s22_s10 }
   0xc   :  { %p302_p5 = scmp.lt.s32.totalorder %s300_s19, %s296_s18 }
   0xe   :  { %p303_p6 = por %p302_p5, %p301_p4 }
  0x10   :  { %p304_p7 = pnand %p303_p6, %p297_p3 }
  0x12   :  { %307 = shalt.err (!%p304_p7)
}
  0x13   :  { %s359_s20 = smov 256   ;;  %s360_s21 = smov 16  }
  0x14   :  { %27 = dma.hbm_to_vmem [thread:$0]  %s435_s0, 256, %s22_s10, [#allocation4], %s359_s20, %s359_s20, %s360_s21  }
  0x15   :  { %36 = vsyncadd [#allocation7], 768  ;;  %s361_s24 = smov [#allocation6]   ;;  %s308_s28 = scalar_lea.hbm %s436_s1, 256 }
  0x16   :  { %s39_s25 = sshll.u32 %s361_s24, 4  ;;  %p309_p8 = scmp.ne.s32.totalorder %s436_s1, %s308_s28  ;;  %s40_s25 = int_to_ptr.vmem [resolvable:$true] %s39_s25 }
  0x17   :  { %p312_p9 = scmp.lt.u32.totalorder %s308_s28, %s436_s1 }
  0x19   :  { %p314_p10 = pnand %p312_p9, %p309_p8 }
  0x1b   :  { %317 = shalt.err (!%p314_p10)
}
  0x1c   :  { %s318_s5 = scalar_lea.vmem %s40_s25, 256  ;;  %s322_s0 = scalar_lea.vmem %s40_s25, 1024 }
  0x1d   :  { %p319_p11 = scmp.ne.s32.totalorder %s40_s25, %s318_s5  ;;  %p323_p12 = scmp.lt.s32.totalorder %s40_s25, %s40_s25 }
  0x1e   :  { %p324_p13 = scmp.lt.s32.totalorder %s322_s0, %s318_s5 }
  0x20   :  { %p325_p0 = por %p324_p13, %p323_p12 }
  0x22   :  { %p326_p1 = pnand %p325_p0, %p319_p11 }
  0x24   :  { %329 = shalt.err (!%p326_p1)
}
  0x25   :  { %45 = dma.hbm_to_vmem [thread:$0]  %s436_s1, 256, %s40_s25, [#allocation7], %s359_s20, %s359_s20, %s360_s21  }
  0x26   :  { %352 = dma.done.wait [#allocation4], 1024  }
  0x27   :  { %353 = vsyncadd [#allocation4], 4294966272 }
  0x28   :  { %354 = dma.done.wait [#allocation7], 1024  }
  0x29   :  { %355 = vsyncadd [#allocation7], 4294966272  ;;  %v107_v0 = vlaneseq  ;;  %v362_v1 = vmov 1983009808   ;;  %v74_v3 = vld [vmem:[#allocation6] sm:$0xff]  ;;  %v76_v4 = vld [vmem:[#allocation6 + $0x10] sm:$0xff] }
  0x2a   :  { %v127_v2 = vunpack.c.l.s4 %v362_v1  ;;  %v78_v5 = vld [vmem:[#allocation6 + $0x20] sm:$0xff]  ;;  %v80_v8 = vld [vmem:[#allocation6 + $0x30] sm:$0xff]  ;;  %v75_v15 = vld [vmem:[#allocation6 + $0x8] sm:$0xff]  ;;  %s363_s1 = smov [#allocation8]  }
  0x2b   :  { %v403_v6 = vshrl.u32 %v107_v0, 7  ;;  %v82_v9 = vld [vmem:[#allocation3] sm:$0xff]  ;;  %v84_v10 = vld [vmem:[#allocation3 + $0x10] sm:$0xff]  ;;  %v77_v18 = vld [vmem:[#allocation6 + $0x18] sm:$0xff]  ;;  %s266_s8 = sshll.u32 %s363_s1, 4  ;;  %s267_s8 = int_to_ptr.vmem [resolvable:$true] %s266_s8 }
  0x2c   :  { %v128_v7 = vunpack.c.0.s8 %v127_v2  ;;  %v86_v11 = vld [vmem:[#allocation3 + $0x20] sm:$0xff]  ;;  %v88_v12 = vld [vmem:[#allocation3 + $0x30] sm:$0xff]  ;;  %v90_v13 = vsub.f32 %v74_v3, %v82_v9  ;;  %v92_v14 = vsub.f32 %v76_v4, %v84_v10  ;;  %v79_v19 = vld [vmem:[#allocation6 + $0x28] sm:$0xff]  ;;  %s330_s9 = scalar_lea.vmem %s267_s8, 1024  ;;  %p335_p3 = scmp.lt.s32.totalorder %s267_s8, %s267_s8 }
  0x2d   :  { %v94_v16 = vsub.f32 %v78_v5, %v86_v11  ;;  %v96_v17 = vsub.f32 %v80_v8, %v88_v12  ;;  %v81_v20 = vld [vmem:[#allocation6 + $0x38] sm:$0xff]  ;;  %v83_v24 = vld [vmem:[#allocation3 + $0x8] sm:$0xff]  ;;  %vm111_vm0 = vcmp.lt.s32.totalorder %v403_v6, 2  ;;  %p331_p2 = scmp.ne.s32.totalorder %s267_s8, %s330_s9  ;;  %p336_p4 = scmp.lt.s32.totalorder %s330_s9, %s330_s9 }
  0x2e   :  { %v98_v21 = vmul.f32 %v90_v13, %v90_v13  ;;  %v100_v22 = vmul.f32 %v92_v14, %v92_v14  ;;  %v131_v23 = vsub.s32 %v128_v7, %v403_v6  ;;  %v85_v25 = vld [vmem:[#allocation3 + $0x18] sm:$0xff]  ;;  %v87_v26 = vld [vmem:[#allocation3 + $0x28] sm:$0xff]  ;;  %v91_v30 = vsub.f32 %v75_v15, %v83_v24 }
  0x2f   :  { %v102_v27 = vmul.f32 %v94_v16, %v94_v16  ;;  %v104_v28 = vmul.f32 %v96_v17, %v96_v17  ;;  %v89_v29 = vld [vmem:[#allocation3 + $0x38] sm:$0xff]  ;;  %v93_v31 = vsub.f32 %v77_v18, %v85_v25  ;;  %v95_v34 = vsub.f32 %v79_v19, %v87_v26  ;;  %p337_p5 = por %p336_p4, %p335_p3 }
  0x30   :  { %v122_v32 = vcombine.low %v98_v21, %v100_v22  ;;  %v123_v33 = vcombine.high %v98_v21, %v100_v22  ;;  %v97_v35 = vsub.f32 %v81_v20, %v89_v29  ;;  %v99_v38 = vmul.f32 %v91_v30, %v91_v30 }
  0x31   :  { %v124_v36 = vcombine.low %v102_v27, %v104_v28  ;;  %v125_v37 = vcombine.high %v102_v27, %v104_v28  ;;  %v101_v39 = vmul.f32 %v93_v31, %v93_v31  ;;  %v103_v42 = vmul.f32 %v95_v34, %v95_v34  ;;  %p338_p6 = pnand %p337_p5, %p331_p2 }
  0x32   :  { %v132_v40 = vrot.slane %v122_v32, %v131_v23  ;;  %v139_v41 = vrot.slane %v123_v33, %v131_v23  ;;  %v105_v43 = vmul.f32 %v97_v35, %v97_v35 }
  0x33   :  { %v146_v44 = vrot.slane %v124_v36, %v131_v23  ;;  %v153_v45 = vrot.slane %v125_v37, %v131_v23  ;;  %v158_v46 = vcombine.low %v99_v38, %v101_v39  ;;  %v159_v47 = vcombine.high %v99_v38, %v101_v39 }
  0x34   :  { %v160_v48 = vcombine.low %v103_v42, %v105_v43  ;;  %v161_v49 = vcombine.high %v103_v42, %v105_v43 }
  0x35   :  { %v154_v50 = vcombine.low %v132_v40, %v146_v44  ;;  %v155_v51 = vcombine.high %v132_v40, %v146_v44  ;;  %v156_v52 = vcombine.low %v139_v41, %v153_v45  ;;  %v157_v53 = vcombine.high %v139_v41, %v153_v45 }
  0x36   :  { %v168_v54 = vrot.slane %v158_v46, %v131_v23  ;;  %v182_v55 = vrot.slane %v160_v48, %v131_v23  ;;  %v175_v56 = vrot.slane %v159_v47, %v131_v23  ;;  %v189_v57 = vrot.slane %v161_v49, %v131_v23 }
  0x37   :  { %v202_v58 = vsel %vm111_vm0, %v154_v50, 0.0  ;;  %v203_v59 = vsel %vm111_vm0, %v155_v51, 0.0  ;;  %v204_v60 = vsel %vm111_vm0, %v156_v52, 0.0  ;;  %v205_v61 = vsel %vm111_vm0, %v157_v53, 0.0 }
  0x38   :  { %252 = vst [vmem:[#allocation8] sm:$0xff] %v202_v58  ;;  %253 = vst [vmem:[#allocation8 + $0x8] sm:$0xff] %v203_v59  ;;  %v190_v62 = vcombine.low %v168_v54, %v182_v55  ;;  %v191_v63 = vcombine.high %v168_v54, %v182_v55  ;;  %v192_v0 = vcombine.low %v175_v56, %v189_v57 }
  0x39   :  { %254 = vst [vmem:[#allocation8 + $0x10] sm:$0xff] %v204_v60  ;;  %255 = vst [vmem:[#allocation8 + $0x18] sm:$0xff] %v205_v61  ;;  %v193_v1 = vcombine.high %v175_v56, %v189_v57 }
  0x3a   :  { %v206_v2 = vsel %vm111_vm0, %v190_v62, 0.0  ;;  %v207_v3 = vsel %vm111_vm0, %v191_v63, 0.0  ;;  %v208_v4 = vsel %vm111_vm0, %v192_v0, 0.0 }
  0x3b   :  { %v209_v5 = vsel %vm111_vm0, %v193_v1, 0.0  ;;  %256 = vst [vmem:[#allocation8 + $0x20] sm:$0xff] %v206_v2  ;;  %257 = vst [vmem:[#allocation8 + $0x28] sm:$0xff] %v207_v3 }
  0x3c   :  { %258 = vst [vmem:[#allocation8 + $0x30] sm:$0xff] %v208_v4  ;;  %259 = vst [vmem:[#allocation8 + $0x38] sm:$0xff] %v209_v5 }
  0x3d   :  { %341 = shalt.err (!%p338_p6)
}
  0x3e   :  { %s342_s12 = scalar_lea.hbm %s437_s2, 1024 }
  0x3f   :  { %p343_p7 = scmp.ne.s32.totalorder %s437_s2, %s342_s12  ;;  %p346_p8 = scmp.lt.u32.totalorder %s342_s12, %s437_s2 }
  0x41   :  { %p348_p9 = pnand %p346_p8, %p343_p7 }
  0x43   :  { %351 = shalt.err (!%p348_p9)
}
  0x44   :  { %269 = dma.vmem_to_hbm [thread:$0]  %s267_s8, 1024, %s437_s2, [#allocation5]  }
  0x45   :  { %356 = dma.done.wait [#allocation5], 1024  }
  0x46   :  { %357 = vsyncadd [#allocation5], 4294966272 }
  0x47   :  { %273 = vsyncpa [#allocation4], 1 }
  0x48   :  { %274 = vsyncpa [#allocation7], 1 }
  0x49   :  { %275 = vsyncpa [#allocation5], 1 }

</bundles_post_ra>
